<compile_context>
chip_gen: v5e
topology: v5e:2x2
jax: 0.10.0
libtpu: 0.0.40
codegen_flags: <defaults>
</compile_context>

<pallas_src>
import functools

import jax
import jax.numpy as jnp
from jax.experimental import pallas as pl
from jax.experimental.pallas import tpu as pltpu


def _ce_onehot_kernel(x_ref, lbl_ref, w_ref, out_ref, *,
                      num_classes, valid_h, need_mask):
    """One grid step: one batch element x one H-tile.

    x_ref:   (1, C, TH, W)  logits tile (any float dtype; cast to f32 here)
    lbl_ref: (1, TH, W)     int32 labels tile
    w_ref:   (C,)           f32 per-class loss weights (SMEM)
    out_ref: (1, 1, 8, 128) f32 partial-sum block (only [0,0,0,0] is nonzero)
    """
    labels = lbl_ref[0]                                        # (TH, W)

    # Per-pixel max over the C class planes (C small & static -> unrolled).
    m = x_ref[0, 0].astype(jnp.float32)
    for c in range(1, num_classes):
        m = jnp.maximum(m, x_ref[0, c].astype(jnp.float32))

    sum_exp = jnp.zeros_like(m)
    x_sel = jnp.zeros_like(m)      # x[label]
    w_sel = jnp.zeros_like(m)      # loss_weight[label]
    for c in range(num_classes):
        xc = x_ref[0, c].astype(jnp.float32)
        sum_exp = sum_exp + jnp.exp(xc - m)
        is_c = labels == c
        x_sel = jnp.where(is_c, xc, x_sel)
        w_sel = jnp.where(is_c, w_ref[c], w_sel)

    # -w[label]*log_softmax(x)[label] == w[label]*(m + log(sum_exp) - x[label])
    per_pix = w_sel * (m + jnp.log(sum_exp) - x_sel)           # (TH, W)

    if need_mask:
        # Remainder H-tile: rows >= valid_h hold undefined data -> contribute 0.
        th = per_pix.shape[0]
        row = pl.program_id(1) * th + jax.lax.broadcasted_iota(
            jnp.int32, per_pix.shape, 0)
        per_pix = jnp.where(row < valid_h, per_pix, 0.0)

    total = jnp.sum(per_pix)

    # Lane-dense (8,128) output block: partial sum at [0,0], zeros elsewhere.
    r = jax.lax.broadcasted_iota(jnp.int32, (8, 128), 0)
    c_ = jax.lax.broadcasted_iota(jnp.int32, (8, 128), 1)
    out_ref[0, 0] = jnp.where((r == 0) & (c_ == 0), total, 0.0)


def _pick_tile_h(H, C, W, itemsize, target_tile_bytes):
    """Rows per H-tile so one logits tile is roughly target_tile_bytes."""
    th = target_tile_bytes // max(1, C * W * itemsize)
    th = max(8, (th // 8) * 8)          # sublane dim must be a multiple of 8
    if th >= H:
        return H, 1                     # full-H tile (always a legal block dim)
    return th, pl.cdiv(H, th)


def cross_entropy_with_one_hot(logits_nchw, labels_nhw, loss_weight, *,
                               target_tile_bytes=2 << 20):
    """Returns the scalar loss (float32). Inputs stay in NCHW / NHW layout."""
    N, C, H, W = logits_nchw.shape
    assert labels_nhw.shape == (N, H, W)

    labels = labels_nhw.astype(jnp.int32)
    w = jnp.asarray(loss_weight, dtype=jnp.float32).reshape(C)

    itemsize = jnp.dtype(logits_nchw.dtype).itemsize
    TH, n_h = _pick_tile_h(H, C, W, itemsize, target_tile_bytes)
    need_mask = (H % TH) != 0

    kernel = functools.partial(
        _ce_onehot_kernel, num_classes=C, valid_h=H, need_mask=need_mask)

    partials = pl.pallas_call(
        kernel,
        out_shape=jax.ShapeDtypeStruct((N, n_h, 8, 128), jnp.float32),
        grid_spec=pltpu.PrefetchScalarGridSpec(
            num_scalar_prefetch=0,
            grid=(N, n_h),
            in_specs=[
                # logits tile: (1, C, TH, W) -- TH on sublanes, W on lanes
                pl.BlockSpec((1, C, TH, W), lambda n, h: (n, 0, h, 0)),
                # labels tile: (1, TH, W)
                pl.BlockSpec((1, TH, W), lambda n, h: (n, h, 0)),
                # per-class weights: whole (C,) vector in SMEM
                pl.BlockSpec(memory_space=pltpu.SMEM),
            ],
            # One lane-dense (8,128) partial-sum block per grid step
            # (distinct blocks per step -> grid can run fully parallel).
            out_specs=pl.BlockSpec((1, 1, 8, 128), lambda n, h: (n, h, 0, 0)),
        ),
        compiler_params=pltpu.CompilerParams(
            dimension_semantics=("parallel", "parallel"),
            vmem_limit_bytes=32 * 1024 * 1024,
        ),
    )(logits_nchw, labels, w)

    # Final reduction + (unweighted, matching torch.mean) normalization in JAX.
    # TODO(synk): torch.nn.CrossEntropyLoss(weight=...) would divide by
    # sum(loss_weight[label]) instead; the original module uses a plain mean.
    return jnp.sum(partials) / jnp.float32(N * H * W)


def _reference_loss(logits_nchw, labels_nhw, loss_weight):
    """Pure-JAX reference mirroring the PyTorch forward."""
    N, C, H, W = logits_nchw.shape
    logp = jax.nn.log_softmax(logits_nchw.astype(jnp.float32), axis=1)
    logp = jnp.transpose(logp, (0, 2, 3, 1)).reshape(-1, C)
    onehot = jax.nn.one_hot(labels_nhw.reshape(-1), C, dtype=jnp.float32)
    w = jnp.asarray(loss_weight, dtype=jnp.float32).reshape(1, C)
    return jnp.mean(-jnp.sum(onehot * logp * w, axis=1))


if __name__ == "__main__":
    key = jax.random.PRNGKey(0)

    # ---- main example: N=2, NUM_CLASS=4, H=W=16 (single full-H tile) --------
    N, C, H, W = 2, 4, 16, 16
    k_x, k_lbl = jax.random.split(key)
    logits = jax.random.normal(k_x, (N, C, H, W), dtype=jnp.float32)
    labels = jax.random.randint(k_lbl, (N, H, W), 0, C, dtype=jnp.int32)
    loss_weight = jnp.linspace(0.5, 1.5, C, dtype=jnp.float32)

    loss = jax.block_until_ready(
        cross_entropy_with_one_hot(logits, labels, loss_weight))
    ref = jax.block_until_ready(_reference_loss(logits, labels, loss_weight))
    assert jnp.allclose(loss, ref, rtol=1e-5, atol=1e-5), (loss, ref)

    # ---- remainder / multi-tile path: H=20 with a tiny tile budget ----------
    H2 = 20
    k_x2, k_lbl2 = jax.random.split(k_x)
    logits2 = jax.random.normal(k_x2, (N, C, H2, W), dtype=jnp.float32)
    labels2 = jax.random.randint(k_lbl2, (N, H2, W), 0, C, dtype=jnp.int32)
    loss2 = jax.block_until_ready(
        cross_entropy_with_one_hot(logits2, labels2, loss_weight,
                                   target_tile_bytes=2048))  # TH=8 -> 3 tiles
    ref2 = jax.block_until_ready(_reference_loss(logits2, labels2, loss_weight))
    assert jnp.allclose(loss2, ref2, rtol=1e-5, atol=1e-5), (loss2, ref2)

    print("KERNEL_OK")
</pallas_src>

<mosaic_0001>
module attributes {stable_mosaic.version = 11 : i64} {
  func.func @_ce_onehot_kernel(%arg0: i32, %arg1: i32, %arg2: memref<1x4x16x16xf32, #tpu.memory_space<vmem>>, %arg3: memref<1x16x16xi32, #tpu.memory_space<vmem>>, %arg4: memref<4xf32, #tpu.memory_space<smem>>, %arg5: memref<1x1x8x128xf32, #tpu.memory_space<vmem>>) attributes {dimension_semantics = [#tpu.dimension_semantics<parallel>, #tpu.dimension_semantics<parallel>], iteration_bounds = array<i64: 2, 1>, scalar_prefetch = 0 : i64, scratch_operands = 0 : i64, tpu.core_type = #tpu.core_type<tc>, window_params = [{transform_indices = @transform_0, window_bounds = array<i64: 1, 4, 16, 16>}, {transform_indices = @transform_1, window_bounds = array<i64: 1, 16, 16>}, {transform_indices = @transform_2, window_bounds = array<i64: 4>}, {transform_indices = @transform_3, window_bounds = array<i64: 1, 1, 8, 128>}]} {
    %c0 = arith.constant 0 : index
    %c0_0 = arith.constant 0 : index
    %c0_1 = arith.constant 0 : index
    %0 = vector.load %arg3[%c0, %c0_0, %c0_1] : memref<1x16x16xi32, #tpu.memory_space<vmem>>, vector<1x16x16xi32>
    %1 = vector.shape_cast %0 : vector<1x16x16xi32> to vector<16x16xi32>
    %c0_2 = arith.constant 0 : index
    %c0_3 = arith.constant 0 : index
    %c0_4 = arith.constant 0 : index
    %c0_5 = arith.constant 0 : index
    %2 = vector.load %arg2[%c0_2, %c0_3, %c0_4, %c0_5] : memref<1x4x16x16xf32, #tpu.memory_space<vmem>>, vector<1x1x16x16xf32>
    %3 = vector.shape_cast %2 : vector<1x1x16x16xf32> to vector<16x16xf32>
    %c0_6 = arith.constant 0 : index
    %c1 = arith.constant 1 : index
    %c0_7 = arith.constant 0 : index
    %c0_8 = arith.constant 0 : index
    %4 = vector.load %arg2[%c0_6, %c1, %c0_7, %c0_8] : memref<1x4x16x16xf32, #tpu.memory_space<vmem>>, vector<1x1x16x16xf32>
    %5 = vector.shape_cast %4 : vector<1x1x16x16xf32> to vector<16x16xf32>
    %6 = arith.maximumf %3, %5 : vector<16x16xf32>
    %c0_9 = arith.constant 0 : index
    %c2 = arith.constant 2 : index
    %c0_10 = arith.constant 0 : index
    %c0_11 = arith.constant 0 : index
    %7 = vector.load %arg2[%c0_9, %c2, %c0_10, %c0_11] : memref<1x4x16x16xf32, #tpu.memory_space<vmem>>, vector<1x1x16x16xf32>
    %8 = vector.shape_cast %7 : vector<1x1x16x16xf32> to vector<16x16xf32>
    %9 = arith.maximumf %6, %8 : vector<16x16xf32>
    %c0_12 = arith.constant 0 : index
    %c3 = arith.constant 3 : index
    %c0_13 = arith.constant 0 : index
    %c0_14 = arith.constant 0 : index
    %10 = vector.load %arg2[%c0_12, %c3, %c0_13, %c0_14] : memref<1x4x16x16xf32, #tpu.memory_space<vmem>>, vector<1x1x16x16xf32>
    %11 = vector.shape_cast %10 : vector<1x1x16x16xf32> to vector<16x16xf32>
    %12 = arith.maximumf %9, %11 : vector<16x16xf32>
    %cst = arith.constant 0.000000e+00 : f32
    %13 = vector.broadcast %cst : f32 to vector<16x16xf32>
    %cst_15 = arith.constant 0.000000e+00 : f32
    %14 = vector.broadcast %cst_15 : f32 to vector<16x16xf32>
    %cst_16 = arith.constant 0.000000e+00 : f32
    %15 = vector.broadcast %cst_16 : f32 to vector<16x16xf32>
    %c0_17 = arith.constant 0 : index
    %c0_18 = arith.constant 0 : index
    %c0_19 = arith.constant 0 : index
    %c0_20 = arith.constant 0 : index
    %16 = vector.load %arg2[%c0_17, %c0_18, %c0_19, %c0_20] : memref<1x4x16x16xf32, #tpu.memory_space<vmem>>, vector<1x1x16x16xf32>
    %17 = vector.shape_cast %16 : vector<1x1x16x16xf32> to vector<16x16xf32>
    %18 = arith.subf %17, %12 : vector<16x16xf32>
    %19 = math.exp %18 : vector<16x16xf32>
    %20 = arith.addf %13, %19 : vector<16x16xf32>
    %c0_i32 = arith.constant 0 : i32
    %21 = vector.broadcast %c0_i32 : i32 to vector<16x16xi32>
    %22 = arith.cmpi eq, %1, %21 : vector<16x16xi32>
    %23 = arith.select %22, %17, %14 : vector<16x16xi1>, vector<16x16xf32>
    %c0_21 = arith.constant 0 : index
    %24 = memref.load %arg4[%c0_21] : memref<4xf32, #tpu.memory_space<smem>>
    %25 = vector.broadcast %24 : f32 to vector<16x16xf32>
    %26 = arith.select %22, %25, %15 : vector<16x16xi1>, vector<16x16xf32>
    %c0_22 = arith.constant 0 : index
    %c1_23 = arith.constant 1 : index
    %c0_24 = arith.constant 0 : index
    %c0_25 = arith.constant 0 : index
    %27 = vector.load %arg2[%c0_22, %c1_23, %c0_24, %c0_25] : memref<1x4x16x16xf32, #tpu.memory_space<vmem>>, vector<1x1x16x16xf32>
    %28 = vector.shape_cast %27 : vector<1x1x16x16xf32> to vector<16x16xf32>
    %29 = arith.subf %28, %12 : vector<16x16xf32>
    %30 = math.exp %29 : vector<16x16xf32>
    %31 = arith.addf %20, %30 : vector<16x16xf32>
    %c1_i32 = arith.constant 1 : i32
    %32 = vector.broadcast %c1_i32 : i32 to vector<16x16xi32>
    %33 = arith.cmpi eq, %1, %32 : vector<16x16xi32>
    %34 = arith.select %33, %28, %23 : vector<16x16xi1>, vector<16x16xf32>
    %c1_26 = arith.constant 1 : index
    %35 = memref.load %arg4[%c1_26] : memref<4xf32, #tpu.memory_space<smem>>
    %36 = vector.broadcast %35 : f32 to vector<16x16xf32>
    %37 = arith.select %33, %36, %26 : vector<16x16xi1>, vector<16x16xf32>
    %c0_27 = arith.constant 0 : index
    %c2_28 = arith.constant 2 : index
    %c0_29 = arith.constant 0 : index
    %c0_30 = arith.constant 0 : index
    %38 = vector.load %arg2[%c0_27, %c2_28, %c0_29, %c0_30] : memref<1x4x16x16xf32, #tpu.memory_space<vmem>>, vector<1x1x16x16xf32>
    %39 = vector.shape_cast %38 : vector<1x1x16x16xf32> to vector<16x16xf32>
    %40 = arith.subf %39, %12 : vector<16x16xf32>
    %41 = math.exp %40 : vector<16x16xf32>
    %42 = arith.addf %31, %41 : vector<16x16xf32>
    %c2_i32 = arith.constant 2 : i32
    %43 = vector.broadcast %c2_i32 : i32 to vector<16x16xi32>
    %44 = arith.cmpi eq, %1, %43 : vector<16x16xi32>
    %45 = arith.select %44, %39, %34 : vector<16x16xi1>, vector<16x16xf32>
    %c2_31 = arith.constant 2 : index
    %46 = memref.load %arg4[%c2_31] : memref<4xf32, #tpu.memory_space<smem>>
    %47 = vector.broadcast %46 : f32 to vector<16x16xf32>
    %48 = arith.select %44, %47, %37 : vector<16x16xi1>, vector<16x16xf32>
    %c0_32 = arith.constant 0 : index
    %c3_33 = arith.constant 3 : index
    %c0_34 = arith.constant 0 : index
    %c0_35 = arith.constant 0 : index
    %49 = vector.load %arg2[%c0_32, %c3_33, %c0_34, %c0_35] : memref<1x4x16x16xf32, #tpu.memory_space<vmem>>, vector<1x1x16x16xf32>
    %50 = vector.shape_cast %49 : vector<1x1x16x16xf32> to vector<16x16xf32>
    %51 = arith.subf %50, %12 : vector<16x16xf32>
    %52 = math.exp %51 : vector<16x16xf32>
    %53 = arith.addf %42, %52 : vector<16x16xf32>
    %c3_i32 = arith.constant 3 : i32
    %54 = vector.broadcast %c3_i32 : i32 to vector<16x16xi32>
    %55 = arith.cmpi eq, %1, %54 : vector<16x16xi32>
    %56 = arith.select %55, %50, %45 : vector<16x16xi1>, vector<16x16xf32>
    %c3_36 = arith.constant 3 : index
    %57 = memref.load %arg4[%c3_36] : memref<4xf32, #tpu.memory_space<smem>>
    %58 = vector.broadcast %57 : f32 to vector<16x16xf32>
    %59 = arith.select %55, %58, %48 : vector<16x16xi1>, vector<16x16xf32>
    %60 = math.log %53 : vector<16x16xf32>
    %61 = arith.addf %12, %60 : vector<16x16xf32>
    %62 = arith.subf %61, %56 : vector<16x16xf32>
    %63 = arith.mulf %59, %62 : vector<16x16xf32>
    %64 = vector.shape_cast %63 : vector<16x16xf32> to vector<1x16x16xf32>
    %cst_37 = arith.constant dense<0.000000e+00> : vector<1xf32>
    %65 = vector.multi_reduction <add>, %64, %cst_37 [1, 2] : vector<1x16x16xf32> to vector<1xf32>
    %66 = vector.shape_cast %65 : vector<1xf32> to vector<1x1x1xf32>
    %67 = vector.extract %66[0, 0, 0] : f32 from vector<1x1x1xf32>
    %68 = tpu.iota {dimensions = array<i32: 0>} : vector<8x128xi32>
    %69 = tpu.iota {dimensions = array<i32: 1>} : vector<8x128xi32>
    %c0_i32_38 = arith.constant 0 : i32
    %70 = vector.broadcast %c0_i32_38 : i32 to vector<8x128xi32>
    %71 = arith.cmpi eq, %68, %70 : vector<8x128xi32>
    %c0_i32_39 = arith.constant 0 : i32
    %72 = vector.broadcast %c0_i32_39 : i32 to vector<8x128xi32>
    %73 = arith.cmpi eq, %69, %72 : vector<8x128xi32>
    %74 = arith.andi %71, %73 : vector<8x128xi1>
    %cst_40 = arith.constant 0.000000e+00 : f32
    %75 = vector.broadcast %67 : f32 to vector<8x128xf32>
    %76 = vector.broadcast %cst_40 : f32 to vector<8x128xf32>
    %77 = arith.select %74, %75, %76 : vector<8x128xi1>, vector<8x128xf32>
    %c0_41 = arith.constant 0 : index
    %c0_42 = arith.constant 0 : index
    %c0_43 = arith.constant 0 : index
    %c0_44 = arith.constant 0 : index
    %78 = vector.load %arg5[%c0_41, %c0_42, %c0_43, %c0_44] : memref<1x1x8x128xf32, #tpu.memory_space<vmem>>, vector<1x1x8x128xf32>
    %79 = vector.shape_cast %78 : vector<1x1x8x128xf32> to vector<8x128xf32>
    %80 = vector.shape_cast %77 : vector<8x128xf32> to vector<1x1x8x128xf32>
    tpu.vector_store %arg5[%c0_41, %c0_42, %c0_43, %c0_44], %80 {strides = array<i32>} : memref<1x1x8x128xf32, #tpu.memory_space<vmem>>, vector<1x1x8x128xf32>,
    return
  }
  func.func @transform_0(%arg0: i32, %arg1: i32) -> (i32, i32, i32, i32) {
    %c0_i32 = arith.constant 0 : i32
    %c0_i32_0 = arith.constant 0 : i32
    %c0_i32_1 = arith.constant 0 : i32
    return %arg0, %c0_i32, %arg1, %c0_i32_0 : i32, i32, i32, i32
  }
  func.func @transform_1(%arg0: i32, %arg1: i32) -> (i32, i32, i32) {
    %c0_i32 = arith.constant 0 : i32
    %c0_i32_0 = arith.constant 0 : i32
    return %arg0, %arg1, %c0_i32 : i32, i32, i32
  }
  func.func @transform_2(%arg0: i32, %arg1: i32) -> i32 {
    %c0_i32 = arith.constant 0 : i32
    %c0_i32_0 = arith.constant 0 : i32
    return %c0_i32 : i32
  }
  func.func @transform_3(%arg0: i32, %arg1: i32) -> (i32, i32, i32, i32) {
    %c0_i32 = arith.constant 0 : i32
    %c0_i32_0 = arith.constant 0 : i32
    %c0_i32_1 = arith.constant 0 : i32
    return %arg0, %arg1, %c0_i32, %c0_i32_0 : i32, i32, i32, i32
  }
}

</mosaic_0001>

<bundles_post_ra>
// kernel: tpu_custom_call.1
= control target key start
LH: loop header
LB: loop body
LE: loop exit
PB: predicated region body
PF: predicated region fallthrough
CT: control target
= control target key end

     0   :  { %s1079_s0 = inlined_call_operand.hbm [shape: f32[2,4,16,16], index: 0, kind: input, shape index: {}]   ;;  %s1080_s1 = inlined_call_operand.hbm [shape: s32[2,16,16], index: 1, kind: input, shape index: {}]   ;;  %s1081_s2 = inlined_call_operand.vmem [shape: f32[4], index: 2, kind: input, shape index: {}]   ;;  %s1082_s3 = inlined_call_operand.hbm [shape: f32[2,1,8,128], index: 3, kind: output, shape index: {}]  }
   0x1   :  { %1086 = sst [smem:[#allocation16_spill]] %s1081_s2 }
   0x2   :  { %8 = vsyncpa [#allocation3], 0 }
   0x3   :  { %10 = vsyncpa [#allocation3 + $0x1], 0 }
   0x4   :  { %11 = vsyncpa [#allocation7], 0 }
   0x5   :  { %13 = vsyncpa [#allocation7 + $0x1], 0 }
   0x6   :  { %14 = vsyncpa [#allocation5], 0 }
   0x7   :  { %15 = vsyncpa [#allocation4], 0 }
   0x8   :  { %17 = vsyncpa [#allocation4 + $0x1], 0  ;;  %s847_s12 = smov 0   ;;  %s849_s13 = smov 0  }
   0x9   :  { %s851_s14 = smov 0   ;;  %s853_s15 = smov 0  }
   0xa   :  { %s855_s16 = smov 0   ;;  %s857_s17 = smov 0  }
   0xb LB: > { %1087 = sst [smem:[#allocation14_spill]] %s822_s17  ;;  %s524_s18 = sadd.s32 4294967295, %s822_s17   ;;  %s822_s17 = sphi %s857_s17, %s23_s17   ;;  %s818_s16 = sphi %s855_s16, %s1103_s16   ;;  %s814_s15 = sphi %s853_s15, %s1102_s15   ;;  %s810_s14 = sphi %s851_s14, %s1101_s14   ;;  %s806_s13 = sphi %s849_s13, %s1100_s13   ;;  %s802_s12 = sphi %s847_s12, %s1099_s12  }
   0xc   : > { %s525_s19 = sadd.s32 4294967294, %s822_s17   ;;  %s44_s20 = sadd.s32 1, %s810_s14 }
   0xd   : > { %p51_p0 = scmp.ne.s32.totalorder %s810_s14, %s806_s13  ;;  %p52_p1 = scmp.eq.s32.totalorder %s822_s17, 0 }
   0xe   : > { %p57_p2 = scmp.ne.s32.totalorder %s806_s13, %s802_s12  ;;  %p885_p3 = scmp.eq.s32.totalorder %s524_s18, 0 }
   0xf   : > { %p132_p4 = scmp.eq.s32.totalorder %s524_s18, 1  ;;  %p889_p5 = por %p52_p1, %p51_p0 }
  0x10   : > { %p138_p6 = scmp.eq.s32.totalorder %s525_s19, 1  ;;  %p895_p7 = por %p885_p3, %p57_p2 }
  0x11   : > { %p899_p8 = por %p132_p4, %p51_p0  ;;  %p526_p10 = scmp.ge.s32.totalorder %s822_s17, 1 }
  0x12   : > { %p903_p9 = por %p138_p6, %p57_p2  ;;  %p145_p11 = scmp.lt.s32.totalorder %s822_s17, 3 }
  0x13   : > { %s1093_s2 = sld [smem:[#allocation16_spill]]  ;;  %p528_p13 = scmp.ge.s32.totalorder %s822_s17, 2 }
  0x14   : > { %p912_p12 = pnand %p526_p10, %p145_p11  ;;  %p583_p0 = scmp.lt.s32.totalorder %s822_s17, 2 }
  0x15   : > { %s35_s4 = sadd.s32 1, %s818_s16  ;;  %s930_s5 = sand.u32 1, %s810_s14  }
  0x16   : > { %p567_p1 = pneg %p912_p12  ;;  %p922_p2 = pnand %p583_p0, %p889_p5 }
  0x17   : > { %p37_p6 = scmp.ge.s32.totalorder %s35_s4, 2  ;;  %s824_s6 = smov [#allocation8]  }
  0x18   : > { %p568_p4 = pnand %p567_p1, %p885_p3  ;;  %s529_s7 = sshll.u32 %s930_s5, 6 }
  0x19   : > { %s157_s28 = sshll.u32 %s1093_s2, 4  ;;  %s1105_s4 = smov (%p37_p6, %s35_s4), 0  ;;  %s158_s28 = int_to_ptr.vmem [resolvable:$true] %s157_s28 }
  0x1a   : > { %570 = dma.vmem_to_smem (!%p568_p4), %s158_s28, 16, %s824_s6, [#allocation5]  }
  0x1b   : > { %1096 = sst [smem:[#allocation15_spill]] %s1105_s4  ;;  %s39_s8 = ssub.s32 %s818_s16, %s1105_s4 }
  0x1c   : > { %p42_p5 = scmp.eq.s32.totalorder %s39_s8, 0  ;;  %s553_s9 = sshll.u32 %s818_s16, 6 }
  0x1d   : > { %s179_s18 = scalar_lea.hbm %s1079_s0, %s553_s9  ;;  %s172_s19 = scalar_lea.vmem [#allocation2], %s529_s7 }
  0x1e   : > { %s182_s22 = sshll.u32 %s172_s19, 4  ;;  %s180_s27 = sshll.u32 %s179_s18, 4  ;;  %s183_s22 = int_to_ptr.vmem [resolvable:$true] %s182_s22  ;;  %s181_s27 = int_to_ptr.hbm [resolvable:$true] %s180_s27 }
  0x1f   : > { %s944_s26 = scalar_select %p42_p5, %s810_s14, %s44_s20  }
  0x20   : > { %s169_s28 = scalar_lea.sflag [#allocation3], %s930_s5  ;;  %s825_s6 = smov 128  }
  0x21   : > { %s826_s2 = smov 8   ;;  %s532_s8 = sshll.u32 %s930_s5, 4 }
  0x22   : > { %574 = dma.hbm_to_vmem [thread:$0]  (!%p922_p2), %s181_s27, 1024, %s183_s22, %s169_s28, %s825_s6, %s825_s6, %s826_s2  }
  0x23   : > { %s554_s4 = sshll.u32 %s818_s16, 4  ;;  %s196_s11 = scalar_lea.vmem [#allocation6], %s532_s8 }
  0x24   : > { %s203_s7 = scalar_lea.hbm %s1080_s1, %s554_s4  ;;  %s206_s20 = sshll.u32 %s196_s11, 4  ;;  %s207_s20 = int_to_ptr.vmem [resolvable:$true] %s206_s20 }
  0x25   : > { %s204_s9 = sshll.u32 %s203_s7, 4  ;;  %s193_s18 = scalar_lea.sflag [#allocation7], %s930_s5  ;;  %s205_s9 = int_to_ptr.hbm [resolvable:$true] %s204_s9 }
  0x26   : > { %577 = dma.hbm_to_vmem [thread:$0]  (!%p922_p2), %s205_s9, 256, %s207_s20, %s193_s18, %s825_s6, %s825_s6, %s826_s2  }
  0x27   : > { %218 = sbr.rel (%p912_p12) target bundleno = 280 (0x118), region = 32  ;;  %s960_s19 = sand.u32 (!%p912_p12), 1, %s806_s13  }
  0x28   : > { %s536_s22 = sshll.u32 (!%p912_p12), %s960_s19, 6  ;;  %s221_s17 = scalar_lea.sflag (!%p912_p12), [#allocation3], %s960_s19 }
  0x29   : > { %s224_s4 = scalar_lea.vmem (!%p912_p12), [#allocation2], %s536_s22 }
  0x2c   : > { %785 = dma.done.wait (%p895_p7), %s221_s17, 1024  }
  0x2d   : > { %787 = vsyncadd (%p895_p7), %s221_s17, 4294966272  ;;  %s537_s2 = sshll.u32 %s960_s19, 4  ;;  %s231_s29 = scalar_lea.sflag [#allocation7], %s960_s19 }
  0x2e   : > { %s970_s30 = scalar_lea.vmem [#allocation6], %s537_s2 }
  0x2f   : > { %789 = dma.done.wait (%p895_p7), %s231_s29, 256  }
  0x30   : > { %791 = vsyncadd (%p895_p7), %s231_s29, 4294967040 }
  0x31   : > { %793 = dma.done.wait (%p885_p3), [#allocation5], 16  }
  0x32   : > { %795 = vsyncadd (%p885_p3), [#allocation5], 4294967280 }
  0x33   : > { %245 = sfence }
  0x34   : > { %v273_v0 = vld [vmem:[%s224_s4] sm:$0xff]  ;;  %v274_v1 = vld [vmem:[%s224_s4 + $0x8] sm:$0xff]  ;;  %v980_v2 = vld [vmem:[%s224_s4 + $0x10] sm:$0xff]  ;;  %s1016_s21 = sld [smem:[#allocation8]]  ;;  %vm364_vm8 = vcmask 130048   ;;  %s539_s28 = sshll.u32 %s960_s19, 3 }
  0x35   : > { %v982_v3 = vld [vmem:[%s224_s4 + $0x18] sm:$0xff]  ;;  %v278_v4 = vmax.f32 %v273_v0, %v980_v2  ;;  %v986_v6 = vld [vmem:[%s224_s4 + $0x20] sm:$0xff]  ;;  %v988_v7 = vld [vmem:[%s224_s4 + $0x28] sm:$0xff]  ;;  %s1019_s23 = sld [smem:[#allocation8 + $0x1]]  ;;  %s550_s6 = sshll.u32 %s814_s15, 3 }
  0x36   : > { %v279_v5 = vmax.f32 %v274_v1, %v982_v3  ;;  %v990_v8 = vld [vmem:[%s224_s4 + $0x30] sm:$0xff]  ;;  %v992_v9 = vld [vmem:[%s224_s4 + $0x38] sm:$0xff]  ;;  %s1022_s5 = sld [smem:[#allocation8 + $0x2]]  ;;  %s399_s7 = scalar_lea.hbm %s1082_s3, %s550_s6 }
  0x37   : > { %v283_v10 = vmax.f32 %v278_v4, %v986_v6  ;;  %v271_v33 = vld [vmem:[%s970_s30] sm:$0xff]  ;;  %v272_v35 = vld [vmem:[%s970_s30 + $0x8] sm:$0xff]  ;;  %s1026_s27 = sld [smem:[#allocation8 + $0x3]]  ;;  %s268_s9 = scalar_lea.vmem [#allocation9], %s539_s28 }
  0x38   : > { %v284_v11 = vmax.f32 %v279_v5, %v988_v7  ;;  %vm298_vm0 = vcmp.eq.s32.totalorder %v271_v33, 0  ;;  %vm299_vm1 = vcmp.eq.s32.totalorder %v272_v35, 0  ;;  %vm314_vm2 = vcmp.eq.s32.totalorder %v271_v33, 1  ;;  %s401_s11 = sshll.u32 %s268_s9, 4  ;;  %s403_s20 = sshll.u32 %s399_s7, 4  ;;  %s402_s11 = int_to_ptr.vmem [resolvable:$true] %s401_s11  ;;  %s404_s20 = int_to_ptr.hbm [resolvable:$true] %s403_s20 }
  0x39   : > { %v997_v12 = vmax.f32 %v283_v10, %v990_v8  ;;  %v300_v46 = vsel %vm298_vm0, %v273_v0, 0.0  ;;  %v301_v48 = vsel %vm299_vm1, %v274_v1, 0.0  ;;  %vm315_vm3 = vcmp.eq.s32.totalorder %v272_v35, 1  ;;  %s388_s22 = scalar_lea.sflag [#allocation4], %s960_s19  ;;  %s746_s17 = sshra.s32 %s404_s20, 4  ;;  %s747_s17 = int_to_ptr.hbm [resolvable:$true] %s746_s17 }
  0x3a   : > { %v1000_v13 = vmax.f32 %v284_v11, %v992_v9  ;;  %v303_v44 = vstv %s1016_s21  ;;  %v316_v52 = vsel %vm314_vm2, %v980_v2, %v300_v46  ;;  %vm330_vm4 = vcmp.eq.s32.totalorder %v271_v33, 2  ;;  %s748_s15 = scalar_lea.hbm %s747_s17, 8  ;;  %s752_s29 = scalar_lea.hbm %s1082_s3, 16 }
  0x3b   : > { %v290_v14 = vsub.f32 %v273_v0, %v997_v12  ;;  %v306_v16 = vsub.f32 %v980_v2, %v997_v12  ;;  %v322_v18 = vsub.f32 %v986_v6, %v997_v12  ;;  %v338_v23 = vsub.f32 %v990_v8, %v997_v12  ;;  %p749_p3 = scmp.ne.s32.totalorder %s747_s17, %s748_s15  ;;  %p753_p11 = scmp.lt.s32.totalorder %s747_s17, %s1082_s3 }
  0x3c   : > { %v291_v15 = vsub.f32 %v274_v1, %v1000_v13  ;;  %v307_v17 = vsub.f32 %v982_v3, %v1000_v13  ;;  %v323_v19 = vsub.f32 %v988_v7, %v1000_v13  ;;  %v339_v26 = vsub.f32 %v992_v9, %v1000_v13  ;;  %p754_p12 = scmp.lt.s32.totalorder %s752_s29, %s748_s15 }
  0x3d   : > { %v292_v20 = vmul.f32 1.442695, %v290_v14  ;;  %v308_v22 = vmul.f32 1.442695, %v306_v16  ;;  %v324_v25 = vmul.f32 1.442695, %v322_v18  ;;  %v319_v50 = vstv %s1019_s23  ;;  %p750_p7 = pnand %p749_p3, %p899_p8 }
  0x3e   : > { %v294_v21 = vmul.f32 1.442695, %v291_v15  ;;  %v310_v24 = vmul.f32 1.442695, %v307_v17  ;;  %v326_v27 = vmul.f32 1.442695, %v323_v19  ;;  %v317_v53 = vsel %vm315_vm3, %v982_v3, %v301_v48  ;;  %p755_p0 = por %p754_p12, %p753_p11 }
  0x3f   : > { %637 = vpow2.f32 %v292_v20  ;;  %v340_v28 = vmul.f32 1.442695, %v338_v23  ;;  %v342_v29 = vmul.f32 1.442695, %v339_v26  ;;  %v304_v49 = vsel %vm298_vm0, %v303_v44, 0.0  ;;  %p751_p10 = pneg %p750_p7 }
  0x40   : > { %639 = vpow2.f32 %v294_v21  ;;  %v305_v51 = vsel %vm299_vm1, %v303_v44, 0.0  ;;  %vm331_vm5 = vcmp.eq.s32.totalorder %v272_v35, 2  ;;  %v320_v54 = vsel %vm314_vm2, %v319_v50, %v304_v49 }
  0x41   : > { %641 = vpow2.f32 %v308_v22  ;;  %v335_v55 = vstv %s1022_s5  ;;  %v321_v56 = vsel %vm315_vm3, %v319_v50, %v305_v51  ;;  %v332_v57 = vsel %vm330_vm4, %v986_v6, %v316_v52  ;;  %p756_p1 = pnand %p755_p0, %p751_p10 }
  0x42   : > { %643 = vpow2.f32 %v310_v24  ;;  %vm346_vm6 = vcmp.eq.s32.totalorder %v271_v33, 3  ;;  %v333_v59 = vsel %vm331_vm5, %v988_v7, %v317_v53  ;;  %vm347_vm7 = vcmp.eq.s32.totalorder %v272_v35, 3 }
  0x43   : > { %645 = vpow2.f32 %v324_v25  ;;  %v336_v61 = vsel %vm330_vm4, %v335_v55, %v320_v54  ;;  %v351_v62 = vstv %s1026_s27  ;;  %v337_v0 = vsel %vm331_vm5, %v335_v55, %v321_v56 }
  0x44   : > { %647 = vpow2.f32 %v326_v27  ;;  %v348_v1 = vsel %vm346_vm6, %v990_v8, %v332_v57  ;;  %v349_v3 = vsel %vm347_vm7, %v992_v9, %v333_v59  ;;  %v352_v5 = vsel %vm346_vm6, %v351_v62, %v336_v61 }
  0x45   : > { %v638_v30 = vpop.eup %637  ;;  %649 = vpow2.f32 %v340_v28  ;;  %v353_v10 = vsel %vm347_vm7, %v351_v62, %v337_v0 }
  0x46   : > { %v640_v31 = vpop.eup %639  ;;  %651 = vpow2.f32 %v342_v29 }
  0x47   : > { %v642_v32 = vpop.eup %641 }
  0x48   : > { %v644_v34 = vpop.eup %643  ;;  %v312_v36 = vadd.f32 %v642_v32, %v638_v30 }
  0x49   : > { %v646_v37 = vpop.eup %645  ;;  %v313_v38 = vadd.f32 %v644_v34, %v640_v31 }
  0x4a   : > { %v648_v39 = vpop.eup %647  ;;  %v328_v40 = vadd.f32 %v646_v37, %v312_v36 }
  0x4b   : > { %v650_v41 = vpop.eup %649  ;;  %v329_v42 = vadd.f32 %v648_v39, %v313_v38 }
  0x4c   : > { %v652_v43 = vpop.eup %651  ;;  %v344_v45 = vadd.f32 %v650_v41, %v328_v40 }
  0x4d   : > { %v345_v47 = vadd.f32 %v652_v43, %v329_v42 }
  0x4e   : > { %653 = vlog2.f32 %v344_v45 }
  0x4f   : > { %655 = vlog2.f32 %v345_v47 }
  0x54   : > { %v654_v58 = vpop.eup %653 }
  0x55   : > { %v656_v60 = vpop.eup %655  ;;  %v355_v63 = vmul.f32 0.6931472, %v654_v58 }
  0x56   : > { %v357_v2 = vmul.f32 0.6931472, %v656_v60 }
  0x57   : > { %v358_v4 = vadd.f32 %v355_v63, %v997_v12 }
  0x58   : > { %v359_v6 = vadd.f32 %v357_v2, %v1000_v13  ;;  %v377_v13 = vlaneseq }
  0x59   : > { %v360_v11 = vsub.f32 %v358_v4, %v348_v1 }
  0x5a   : > { %v361_v14 = vsub.f32 %v359_v6, %v349_v3  ;;  %v378_v23 = vshrl.u32 %v377_v13, 7  ;;  %v380_v24 = vand.u32 127, %v377_v13 }
  0x5b   : > { %v362_v7 = vmul.f32 %v360_v11, %v352_v5 }
  0x5c   : > { %v363_v15 = vmul.f32 %v361_v14, %v353_v10  ;;  %vm381_vm9 = vcmp.eq.s32.totalorder %v378_v23, 0  ;;  %vm382_vm10 = vcmp.eq.s32.totalorder %v380_v24, 0 }
  0x5d   : > { %v365_v16 = vsel %vm364_vm8, %v362_v7, 0.0  ;;  %vm383_vm11 = vmand %vm381_vm9, %vm382_vm10 }
  0x5e   : > { %v366_v17 = vsel %vm364_vm8, %v363_v15, 0.0 }
  0x5f   : > { %v367_v18 = vadd.f32 %v366_v17, %v365_v16 }
  0x61   : > { %368 = vadd.xlane.f32.xlu0 %v367_v18 }
  0xd4   : > { %v369_v8 = vpop.xlane.xlu0 %368 }
  0xd5   : > { %v370_v19 = vrot.slane %v369_v8, 4 }
  0xd7   : > { %v371_v9 = vadd.f32 %v370_v19, %v369_v8 }
  0xd9   : > { %v372_v20 = vrot.slane %v371_v9, 2 }
  0xdb   : > { %v373_v12 = vadd.f32 %v372_v20, %v371_v9 }
  0xdd   : > { %v374_v21 = vrot.slane %v373_v12, 1 }
  0xdf   : > { %v375_v22 = vadd.f32 %v374_v21, %v373_v12 }
  0xe1   : > { %555 = vpush %v375_v22 }
 0x112   : > { %s556_s18 = spop %555 }
 0x113   : > { %v384_v25 = vstv %s556_s18 }
 0x114   : > { %v385_v26 = vsel %vm383_vm11, %v384_v25, 0.0 }
 0x115   : > { %386 = vst [vmem:[%s268_s9] sm:$0xff] %v385_v26 }
 0x116   : > { %759 = shalt.err (!%p756_p1)
}
 0x117   : > { %565 = dma.vmem_to_hbm [thread:$0]  (%p899_p8), %s402_s11, 128, %s404_s20, %s388_s22  }
 0x118 PF: > { %s1097_s19 = sld [smem:[#allocation14_spill]]  ;;  %s415_s23 = sand.u32 1, %s802_s12  }
 0x119   : > { %p579_p2 = pnand %p528_p13, %p903_p9  ;;  %s416_s5 = scalar_lea.sflag [#allocation4], %s415_s23 }
 0x11b   : > { %p580_p4 = pneg %p579_p2 }
 0x11d   : > { %797 = dma.done.wait (%p580_p4), %s416_s5, 128  }
 0x11e   : > { %799 = vsyncadd (%p580_p4), %s416_s5, 4294967168  ;;  %s23_s17 = sadd.s32 1, %s1097_s19   ;;  %s1098_s24 = sld [smem:[#allocation15_spill]] }
 0x11f   : > { %p20_p6 = scmp.ge.s32.totalorder %s23_s17, 4   ;;  %s1099_s12 = smov %s806_s13 }
 0x120   : > { %s1100_s13 = smov %s810_s14  ;;  %s1101_s14 = smov %s944_s26 }
 0x121   : > { %s1102_s15 = smov %s818_s16  ;;  %22 = sbr.rel (!%p20_p6) target bundleno = 11 (0xb), region = 98 }
 0x124   : > { %s1103_s16 = smov %s1098_s24 }
 0x126   :  { %422 = vsyncpa [#allocation3], 1 }
 0x127   :  { %424 = vsyncpa [#allocation3 + $0x1], 1 }
 0x128   :  { %425 = vsyncpa [#allocation7], 1 }
 0x129   :  { %427 = vsyncpa [#allocation7 + $0x1], 1 }
 0x12a   :  { %428 = vsyncpa [#allocation4], 1 }
 0x12b   :  { %430 = vsyncpa [#allocation4 + $0x1], 1 }
 0x12c   :  { %431 = vsyncpa [#allocation5], 1 }
 0x12d   :  { %433 = vsyncpa [#allocation5 + $0x1], 1 }

</bundles_post_ra>
